<compile_context>
chip_gen: v6e
topology: v6e:2x2x1
jax: 0.10.0
libtpu: 0.0.40
codegen_flags: <defaults>
</compile_context>

<pallas_src>
import functools
import math

import jax
import jax.numpy as jnp
from jax.experimental import pallas as pl
from jax.experimental.pallas import tpu as pltpu


_NEG_INF = -1e30  # finite fill: fully-masked tiles are annihilated by the online-softmax
                  # rescale (exp underflow), avoiding NaN from -inf - (-inf).
_VMEM_LIMIT_BYTES = 48 * 1024 * 1024   # headroom below v7x's 64 MiB physical VMEM


def _pick_col_tile(dout, din, itemsize, n_weights=1, budget=24 << 20):
    """Largest Dout tile (full, or a multiple of 128) whose double-buffered weight slabs fit
    the VMEM budget.  Full Dout keeps weights resident across all row tiles."""
    per_col = din * itemsize * 2 * n_weights           # x2 for double buffering
    if dout * per_col <= budget or dout % 128 != 0 or dout <= 128:
        return dout
    tn = max(128, (budget // per_col) // 128 * 128)
    return int(min(dout, tn))


# ---------------------------------------------------------------------------
# Tiled linear kernel (PyTorch nn.Linear semantics: y = x @ W^T + b)
# Used only as the fallback output projection when w_out is too big to fuse.
# ---------------------------------------------------------------------------
def _linear_kernel(x_ref, w_ref, b_ref, o_ref, *, compute_dtype):
    x = x_ref[...]
    w = w_ref[...]
    if compute_dtype is not None:
        x = x.astype(compute_dtype)
        w = w.astype(compute_dtype)
    y = jax.lax.dot_general(x, w, (((1,), (1,)), ((), ())),
                            preferred_element_type=jnp.float32)
    o_ref[...] = (y + b_ref[...]).astype(o_ref.dtype)


def linear(x2d, w, b, *, compute_dtype=None, out_dtype=None, block_m=512, block_n=None):
    """y = x2d @ w.T + b, tiled over rows and output columns (weights-outer grid)."""
    M, Din = x2d.shape
    Dout = w.shape[0]
    out_dtype = x2d.dtype if out_dtype is None else out_dtype
    tm = M if M <= block_m else block_m
    tn = block_n if block_n is not None else _pick_col_tile(Dout, Din, w.dtype.itemsize)
    return pl.pallas_call(
        functools.partial(_linear_kernel, compute_dtype=compute_dtype),
        out_shape=jax.ShapeDtypeStruct((M, Dout), out_dtype),
        grid=(pl.cdiv(Dout, tn), pl.cdiv(M, tm)),            # weights outer -> fetched once
        in_specs=[pl.BlockSpec((tm, Din), lambda n, i: (i, 0)),
                  pl.BlockSpec((tn, Din), lambda n, i: (n, 0)),
                  pl.BlockSpec((1, tn), lambda n, i: (0, n))],
        out_specs=pl.BlockSpec((tm, tn), lambda n, i: (i, n)),
        compiler_params=pltpu.CompilerParams(
            dimension_semantics=("parallel", "parallel"),
            vmem_limit_bytes=_VMEM_LIMIT_BYTES),
    )(x2d, w, b.reshape(1, Dout))


# ---------------------------------------------------------------------------
# Fused QKV projection (one launch, x read once, three outputs)
# ---------------------------------------------------------------------------
def _qkv_proj_kernel(x_ref, wq_ref, wk_ref, wv_ref, bq_ref, bk_ref, bv_ref,
                     q_ref, k_ref, v_ref, *, compute_dtype):
    x = x_ref[...]
    if compute_dtype is not None:
        x = x.astype(compute_dtype)

    def _proj(w_ref, b_ref, o_ref):
        w = w_ref[...]
        if compute_dtype is not None:
            w = w.astype(compute_dtype)
        y = jax.lax.dot_general(x, w, (((1,), (1,)), ((), ())),
                                preferred_element_type=jnp.float32)
        o_ref[...] = (y + b_ref[...]).astype(o_ref.dtype)

    _proj(wq_ref, bq_ref, q_ref)
    _proj(wk_ref, bk_ref, k_ref)
    _proj(wv_ref, bv_ref, v_ref)


def fused_qkv_projection(x2d, w_q, w_k, w_v, b_q, b_k, b_v, *, compute_dtype=None,
                         out_dtype=None, block_m=512, block_n=None):
    M, Din = x2d.shape
    Dout = w_q.shape[0]
    out_dtype = x2d.dtype if out_dtype is None else out_dtype
    tm = M if M <= block_m else block_m
    tn = block_n if block_n is not None else _pick_col_tile(Dout, Din, w_q.dtype.itemsize,
                                                            n_weights=3)
    out_sds = jax.ShapeDtypeStruct((M, Dout), out_dtype)
    x_spec = pl.BlockSpec((tm, Din), lambda n, i: (i, 0))
    w_spec = pl.BlockSpec((tn, Din), lambda n, i: (n, 0))
    b_spec = pl.BlockSpec((1, tn), lambda n, i: (0, n))
    o_spec = pl.BlockSpec((tm, tn), lambda n, i: (i, n))
    return pl.pallas_call(
        functools.partial(_qkv_proj_kernel, compute_dtype=compute_dtype),
        out_shape=(out_sds, out_sds, out_sds),
        grid=(pl.cdiv(Dout, tn), pl.cdiv(M, tm)),            # weights outer -> fetched once
        in_specs=[x_spec, w_spec, w_spec, w_spec, b_spec, b_spec, b_spec],
        out_specs=(o_spec, o_spec, o_spec),
        compiler_params=pltpu.CompilerParams(
            dimension_semantics=("parallel", "parallel"),
            vmem_limit_bytes=_VMEM_LIMIT_BYTES),
    )(x2d, w_q, w_k, w_v,
      b_q.reshape(1, Dout), b_k.reshape(1, Dout), b_v.reshape(1, Dout))


# ---------------------------------------------------------------------------
# Banded flash-style local attention (all heads per grid step, iota mask,
# per-head accumulator write-back, optional fused output projection)
# ---------------------------------------------------------------------------
def _local_flash_kernel(*refs, num_heads, head_dim, tile, seq_len, half, dilation,
                        global_idx, n_side, n_kv, banded, has_out_proj, compute_dtype):
    if has_out_proj:
        q_ref, k_ref, v_ref, wo_ref, bo_ref, o_ref, m_sc, l_sc, acc_sc = refs
    else:
        q_ref, k_ref, v_ref, o_ref, m_sc, l_sc, acc_sc = refs
        wo_ref = bo_ref = None

    qi = pl.program_id(1)
    kvj = pl.program_id(2)

    if banded:
        ki = qi - n_side + kvj
        valid = jnp.logical_and(ki >= 0, ki < n_kv)
        ki_c = jnp.clip(ki, 0, n_kv - 1)        # must match the kv index_map clamping
    else:
        ki_c = kvj
        valid = None

    @pl.when(kvj == 0)
    def _init():
        m_sc[...] = jnp.full(m_sc.shape, _NEG_INF, dtype=jnp.float32)
        l_sc[...] = jnp.zeros(l_sc.shape, dtype=jnp.float32)
        acc_sc[...] = jnp.zeros(acc_sc.shape, dtype=jnp.float32)

    def _cast(t):
        return t if compute_dtype is None else t.astype(compute_dtype)

    def _compute():
        # In-kernel band/dilation/global mask from iota: no (S, S) mask in HBM/VMEM.
        q_pos = qi * tile + jax.lax.broadcasted_iota(jnp.int32, (tile, tile), 0)
        k_pos = ki_c * tile + jax.lax.broadcasted_iota(jnp.int32, (tile, tile), 1)
        delta = jnp.abs(q_pos - k_pos)
        if dilation == 1:
            band = delta <= half
        elif (dilation & (dilation - 1)) == 0:   # power-of-two: AND beats modulo on the VPU
            band = jnp.logical_and((delta & (dilation - 1)) == 0, delta <= half * dilation)
        else:
            # TODO(synk): exact semantics of xformers utils.local_1d_pattern_dilated
            # unavailable; using (|i-j| % d == 0) & (|i-j| <= half*d).
            band = jnp.logical_and(delta % dilation == 0, delta <= half * dilation)
        for g in global_idx:                     # static, usually empty
            band = jnp.logical_or(band, jnp.logical_or(q_pos == g, k_pos == g))
        mask = jnp.logical_and(band, k_pos < seq_len)   # guard padded edge KV rows

        # Per-head processing with in-place scratch write-back: live ranges stay bounded
        # to one head (no list + concatenate, no lane re-packing).
        for h in range(num_heads):
            lo = h * head_dim
            hs = slice(lo, lo + head_dim)
            col = slice(h, h + 1)
            qh = q_ref[0, :, hs]                 # (tile, Dh), already compute dtype
            kh = k_ref[0, :, hs]
            vh = v_ref[0, :, hs]
            s = jax.lax.dot_general(qh, kh, (((1,), (1,)), ((), ())),
                                    preferred_element_type=jnp.float32)
            s = jnp.where(mask, s, _NEG_INF)
            m_prev = m_sc[:, col]                                        # (tile, 1)
            m_new = jnp.maximum(m_prev, jnp.max(s, axis=-1, keepdims=True))
            alpha = jnp.exp(m_prev - m_new)
            p = jnp.exp(s - m_new)                                       # f32
            l_sc[:, col] = alpha * l_sc[:, col] + jnp.sum(p, axis=-1, keepdims=True)
            m_sc[:, col] = m_new
            pv = jnp.dot(_cast(p), vh, preferred_element_type=jnp.float32)
            acc_sc[:, hs] = alpha * acc_sc[:, hs] + pv

    if banded:
        pl.when(valid)(_compute)   # skip clamped out-of-range band tiles
    else:
        _compute()

    @pl.when(kvj == pl.num_programs(2) - 1)
    def _finalize():
        exact = compute_dtype is None or jnp.dtype(compute_dtype) == jnp.dtype(jnp.float32)
        for h in range(num_heads):
            hs = slice(h * head_dim, (h + 1) * head_dim)
            inv_l = pl.reciprocal(l_sc[:, h:h + 1], approx=not exact)
            acc_sc[:, hs] = acc_sc[:, hs] * inv_l
        if has_out_proj:
            # Fused output projection: one (T, D) @ (D, D)^T per q tile, weight resident
            # in VMEM -> removes two full HBM passes over the attention output.
            y = _cast(acc_sc[...])
            out = jax.lax.dot_general(y, wo_ref[...], (((1,), (1,)), ((), ())),
                                      preferred_element_type=jnp.float32)
            o_ref[0] = (out + bo_ref[...]).astype(o_ref.dtype)
        else:
            o_ref[0] = acc_sc[...].astype(o_ref.dtype)


def dilated_local_attention(q, k, v, num_heads, window_size, dilation_rate=None,
                            global_tokens=None, *, block_q=None, compute_dtype=None,
                            out_dtype=None, w_out=None, b_out=None):
    """q, k, v: (B, S, D) with heads interleaved along D (D = H * Dh). Returns (B, S, D).

    The 1/sqrt(Dh) scale is assumed already folded into q (done in fuse_projection_params).
    If w_out/b_out are given, the output projection is fused into the finalize step.
    """
    B, S, D = q.shape
    assert D % num_heads == 0
    Dh = D // num_heads
    assert window_size % 2 == 1, "window size assumed odd (non-causal local_1d_pattern)"
    half = window_size // 2
    dil = 1 if dilation_rate is None else int(dilation_rate)
    assert dil >= 1
    global_idx = tuple(int(g) for g in global_tokens) if global_tokens is not None else ()
    out_dtype = q.dtype if out_dtype is None else out_dtype

    reach = half * dil                           # max |i - j| inside the (dilated) band
    if block_q is None:
        block_q = 256 if reach >= 128 else 128   # fill the 256-wide MXU on v6e/v7x for big bands
    if S <= block_q:
        T = S
    else:
        assert block_q % 8 == 0, "block_q must be a multiple of 8"
        # Tiny windows: most of a (T, T) score tile is masked but exp() still runs on every
        # element -> shrink T toward the band (>= 64 to amortise ~0.35us per-grid-step overhead).
        band_t = max(64, ((2 * reach + 7) // 8) * 8)
        T = min(block_q, band_t)
    n_q = pl.cdiv(S, T)
    n_kv = n_q
    n_side = pl.cdiv(reach, T)
    # Global tokens break band locality -> sweep all KV tiles in that case.
    banded = (not global_idx) and (2 * n_side + 1 < n_kv)
    n_visit = (2 * n_side + 1) if banded else n_kv

    q_spec = pl.BlockSpec((1, T, D), lambda b, qi, kvj: (b, qi, 0))
    if banded:
        kv_spec = pl.BlockSpec(
            (1, T, D), lambda b, qi, kvj: (b, jnp.clip(qi - n_side + kvj, 0, n_kv - 1), 0))
    else:
        kv_spec = pl.BlockSpec((1, T, D), lambda b, qi, kvj: (b, kvj, 0))

    has_out_proj = w_out is not None
    in_specs = [q_spec, kv_spec, kv_spec]
    args = [q, k, v]
    if has_out_proj:
        in_specs += [pl.BlockSpec((D, D), lambda b, qi, kvj: (0, 0)),
                     pl.BlockSpec((1, D), lambda b, qi, kvj: (0, 0))]
        args += [w_out, b_out.reshape(1, D)]

    kernel = functools.partial(
        _local_flash_kernel, num_heads=num_heads, head_dim=Dh, tile=T, seq_len=S,
        half=half, dilation=dil, global_idx=global_idx, n_side=n_side, n_kv=n_kv,
        banded=banded, has_out_proj=has_out_proj, compute_dtype=compute_dtype)

    return pl.pallas_call(
        kernel,
        out_shape=jax.ShapeDtypeStruct((B, S, D), out_dtype),
        grid=(B, n_q, n_visit),
        in_specs=in_specs,
        out_specs=q_spec,
        scratch_shapes=[pltpu.VMEM((T, num_heads), jnp.float32),   # running max m (per head col)
                        pltpu.VMEM((T, num_heads), jnp.float32),   # running sum l (per head col)
                        pltpu.VMEM((T, D), jnp.float32)],          # output accumulator
        compiler_params=pltpu.CompilerParams(
            dimension_semantics=("parallel", "parallel", "arbitrary"),
            vmem_limit_bytes=_VMEM_LIMIT_BYTES),
    )(*args)


# ---------------------------------------------------------------------------
# Parameter prep: compose the projection chain algebraically (zero runtime cost)
# ---------------------------------------------------------------------------
def fuse_projection_params(params, num_heads, d_model):
    """q = in_q(q_proj(x)), k = in_k(v_proj(x)), v = in_v(v_proj(x))  (k reuses v_proj, as in
    the reference forward).  Also folds the 1/sqrt(Dh) attention scale into the q weights."""
    hp = jax.lax.Precision.HIGHEST   # keep the composition exact in f32
    scale = 1.0 / math.sqrt(d_model // num_heads)
    w_qp, b_qp = params["q_proj"]
    w_vp, b_vp = params["v_proj"]
    w_iq, b_iq = params["in_q"]
    w_ik, b_ik = params["in_k"]
    w_iv, b_iv = params["in_v"]
    w_q = jnp.matmul(w_iq, w_qp, precision=hp) * scale
    b_q = (jnp.matmul(w_iq, b_qp, precision=hp) + b_iq) * scale
    w_k = jnp.matmul(w_ik, w_vp, precision=hp)
    b_k = jnp.matmul(w_ik, b_vp, precision=hp) + b_ik
    w_v = jnp.matmul(w_iv, w_vp, precision=hp)
    b_v = jnp.matmul(w_iv, b_vp, precision=hp) + b_iv
    return {"w_q": w_q, "b_q": b_q, "w_k": w_k, "b_k": b_k, "w_v": w_v, "b_v": b_v,
            "w_out": params["out"][0], "b_out": params["out"][1]}


def multi_head_dilated_local_attention(fused_params, x, num_heads, window_size,
                                       dilation_rate=None, global_tokens=None, *,
                                       block_q=None, compute_dtype=jnp.bfloat16,
                                       fuse_output_projection=None, proj_block_n=None):
    B, S, D = x.shape
    cd = None if compute_dtype is None else jnp.dtype(compute_dtype)

    def _wcast(w):
        return w if cd is None else w.astype(cd)

    x2d = x.reshape(B * S, D)
    qkv_dtype = x.dtype if cd is None else cd            # bf16 q/k/v halve their HBM traffic
    q, k, v = fused_qkv_projection(
        x2d,
        _wcast(fused_params["w_q"]), _wcast(fused_params["w_k"]), _wcast(fused_params["w_v"]),
        fused_params["b_q"], fused_params["b_k"], fused_params["b_v"],
        compute_dtype=cd, out_dtype=qkv_dtype, block_n=proj_block_n)
    # Free reshapes only -- no head fold/unfold HBM transposes anywhere in the forward.
    q = q.reshape(B, S, D)
    k = k.reshape(B, S, D)
    v = v.reshape(B, S, D)

    w_out = _wcast(fused_params["w_out"])
    b_out = fused_params["b_out"]
    if fuse_output_projection is None:
        # Keep w_out resident in the attention kernel only while it comfortably fits VMEM.
        fuse_output_projection = (D * D * w_out.dtype.itemsize) <= (12 << 20)

    if fuse_output_projection:
        return dilated_local_attention(q, k, v, num_heads, window_size, dilation_rate,
                                       global_tokens, block_q=block_q, compute_dtype=cd,
                                       out_dtype=x.dtype, w_out=w_out, b_out=b_out)
    y = dilated_local_attention(q, k, v, num_heads, window_size, dilation_rate,
                                global_tokens, block_q=block_q, compute_dtype=cd,
                                out_dtype=qkv_dtype)
    out = linear(y.reshape(B * S, D), w_out, b_out, compute_dtype=cd,
                 out_dtype=x.dtype, block_n=proj_block_n)
    return out.reshape(B, S, D)


# ---------------------------------------------------------------------------
# Parameters + pure-JAX reference (unfused chain) for correctness checking
# ---------------------------------------------------------------------------
def init_params(key, d_model):
    """Deterministic synthetic init (PyTorch Linear-style uniform bounds)."""
    def lin(k, out_f, in_f):
        k1, k2 = jax.random.split(k)
        bound = 1.0 / math.sqrt(in_f)
        w = jax.random.uniform(k1, (out_f, in_f), jnp.float32, -bound, bound)
        b = jax.random.uniform(k2, (out_f,), jnp.float32, -bound, bound)
        return w, b

    keys = jax.random.split(key, 6)
    return {
        "q_proj": lin(keys[0], d_model, d_model),   # AttentionProjector.q_proj
        "v_proj": lin(keys[1], d_model, d_model),   # AttentionProjector.v_proj (also used for k)
        "in_q":   lin(keys[2], d_model, d_model),   # MultiHeadDispatch in-proj q
        "in_k":   lin(keys[3], d_model, d_model),   # MultiHeadDispatch in-proj k
        "in_v":   lin(keys[4], d_model, d_model),   # MultiHeadDispatch in-proj v
        "out":    lin(keys[5], d_model, d_model),   # MultiHeadDispatch out-proj
    }


def local_1d_mask(seq_len, window_size, dilation_rate=None, global_indices=None):
    """xformers local_1d_pattern (+ dilation/global variants) as a dense bool mask."""
    assert window_size % 2 == 1
    half = window_size // 2
    i = jnp.arange(seq_len)[:, None]
    j = jnp.arange(seq_len)[None, :]
    delta = jnp.abs(i - j)
    if dilation_rate is None or dilation_rate == 1:
        mask = delta <= half
    else:
        mask = (delta % dilation_rate == 0) & (delta <= half * dilation_rate)
    if global_indices is not None:
        g = jnp.zeros((seq_len,), bool).at[jnp.asarray(global_indices)].set(True)
        mask = mask | g[:, None] | g[None, :]
    return mask


def _reference(params, x, num_heads, window_size, dilation_rate=None, global_tokens=None):
    B, S, D = x.shape
    Dh = D // num_heads
    hp = jax.lax.Precision.HIGHEST

    def lin(t, wb):
        w, b = wb
        return jnp.matmul(t, w.T, precision=hp) + b

    q0 = lin(x, params["q_proj"])
    v0 = lin(x, params["v_proj"])
    k0 = v0
    q, k, v = lin(q0, params["in_q"]), lin(k0, params["in_k"]), lin(v0, params["in_v"])

    def fold(t):
        return t.reshape(B, S, num_heads, Dh).transpose(0, 2, 1, 3)

    qf, kf, vf = fold(q), fold(k), fold(v)                  # (B, H, S, Dh)
    s = jnp.einsum("bhqd,bhkd->bhqk", qf / math.sqrt(Dh), kf, precision=hp)
    mask = local_1d_mask(S, window_size, dilation_rate, global_tokens)
    s = jnp.where(mask[None, None], s, -jnp.inf)
    att = jax.nn.softmax(s, axis=-1)
    y = jnp.einsum("bhqk,bhkd->bhqd", att, vf, precision=hp)
    y = y.transpose(0, 2, 1, 3).reshape(B, S, D)
    return lin(y, params["out"])


# ---------------------------------------------------------------------------
if __name__ == "__main__":
    key = jax.random.PRNGKey(0)
    k_params, k_params3, k_x1, k_x2, k_x3 = jax.random.split(key, 5)

    # --- Test 1: small config, exact f32 path (single tile, fused out-proj) ---
    B, S, D, H, W = 2, 16, 32, 4, 5   # batch, seq, d_model, num_heads, window_size
    params = init_params(k_params, D)
    fused = fuse_projection_params(params, H, D)
    x = jax.random.normal(k_x1, (B, S, D), dtype=jnp.float32)
    out = jax.block_until_ready(multi_head_dilated_local_attention(
        fused, x, num_heads=H, window_size=W, compute_dtype=jnp.float32))
    ref = _reference(params, x, H, W)
    assert out.shape == (B, S, D)
    assert jnp.allclose(out, ref, atol=2e-3, rtol=2e-3), "mismatch vs JAX reference (f32 small)"

    # --- Test 2: longer sequence: banded flash tiling + power-of-2 dilation, default bf16 ---
    S2, dil = 128, 2
    x2 = jax.random.normal(k_x2, (B, S2, D), dtype=jnp.float32)
    out2 = jax.block_until_ready(multi_head_dilated_local_attention(
        fused, x2, num_heads=H, window_size=W, dilation_rate=dil, block_q=32))
    ref2 = _reference(params, x2, H, W, dilation_rate=dil)
    err2 = float(jnp.max(jnp.abs(out2 - ref2)))
    assert err2 < 5e-2, f"mismatch vs JAX reference (bf16 banded): max abs err {err2}"

    # --- Test 3: larger d_model: N-tiled projections + unfused out-proj fallback (f32) ---
    B3, S3, D3, H3, W3 = 1, 64, 256, 4, 9
    params3 = init_params(k_params3, D3)
    fused3 = fuse_projection_params(params3, H3, D3)
    x3 = jax.random.normal(k_x3, (B3, S3, D3), dtype=jnp.float32)
    out3 = jax.block_until_ready(multi_head_dilated_local_attention(
        fused3, x3, num_heads=H3, window_size=W3, compute_dtype=jnp.float32,
        fuse_output_projection=False, proj_block_n=128))
    ref3 = _reference(params3, x3, H3, W3)
    assert jnp.allclose(out3, ref3, atol=2e-3, rtol=2e-3), "mismatch vs JAX reference (tiled proj)"

    print("KERNEL_OK")
</pallas_src>

<mosaic_0001>
module attributes {stable_mosaic.version = 11 : i64} {
  func.func @_qkv_proj_kernel(%arg0: i32, %arg1: i32, %arg2: memref<32x32xf32, #tpu.memory_space<vmem>>, %arg3: memref<32x32xf32, #tpu.memory_space<vmem>>, %arg4: memref<32x32xf32, #tpu.memory_space<vmem>>, %arg5: memref<32x32xf32, #tpu.memory_space<vmem>>, %arg6: memref<1x32xf32, #tpu.memory_space<vmem>>, %arg7: memref<1x32xf32, #tpu.memory_space<vmem>>, %arg8: memref<1x32xf32, #tpu.memory_space<vmem>>, %arg9: memref<32x32xf32, #tpu.memory_space<vmem>>, %arg10: memref<32x32xf32, #tpu.memory_space<vmem>>, %arg11: memref<32x32xf32, #tpu.memory_space<vmem>>) attributes {dimension_semantics = [#tpu.dimension_semantics<parallel>, #tpu.dimension_semantics<parallel>], iteration_bounds = array<i64: 1, 1>, scalar_prefetch = 0 : i64, scratch_operands = 0 : i64, tpu.core_type = #tpu.core_type<tc>, window_params = [{transform_indices = @transform_0, window_bounds = array<i64: 32, 32>}, {transform_indices = @transform_1, window_bounds = array<i64: 32, 32>}, {transform_indices = @transform_2, window_bounds = array<i64: 32, 32>}, {transform_indices = @transform_3, window_bounds = array<i64: 32, 32>}, {transform_indices = @transform_4, window_bounds = array<i64: 1, 32>}, {transform_indices = @transform_5, window_bounds = array<i64: 1, 32>}, {transform_indices = @transform_6, window_bounds = array<i64: 1, 32>}, {transform_indices = @transform_7, window_bounds = array<i64: 32, 32>}, {transform_indices = @transform_8, window_bounds = array<i64: 32, 32>}, {transform_indices = @transform_9, window_bounds = array<i64: 32, 32>}]} {
    %c0 = arith.constant 0 : index
    %c0_0 = arith.constant 0 : index
    %0 = vector.load %arg2[%c0, %c0_0] : memref<32x32xf32, #tpu.memory_space<vmem>>, vector<32x32xf32>
    %c0_1 = arith.constant 0 : index
    %c0_2 = arith.constant 0 : index
    %1 = vector.load %arg3[%c0_1, %c0_2] : memref<32x32xf32, #tpu.memory_space<vmem>>, vector<32x32xf32>
    %cst = arith.constant dense<0.000000e+00> : vector<32x32xf32>
    %2 = tpu.matmul %0, %1, %cst {dimension_numbers = #tpu.dot_dimension_numbers<[1], [1], [0], [0], [0, 0, 1, 0], [], []>} : vector<32x32xf32>, vector<32x32xf32>, vector<32x32xf32> -> vector<32x32xf32>
    %c0_3 = arith.constant 0 : index
    %c0_4 = arith.constant 0 : index
    %3 = vector.load %arg6[%c0_3, %c0_4] : memref<1x32xf32, #tpu.memory_space<vmem>>, vector<1x32xf32>
    %4 = vector.broadcast %3 : vector<1x32xf32> to vector<32x32xf32>
    %5 = arith.addf %2, %4 : vector<32x32xf32>
    %c0_5 = arith.constant 0 : index
    %c0_6 = arith.constant 0 : index
    %6 = vector.load %arg9[%c0_5, %c0_6] : memref<32x32xf32, #tpu.memory_space<vmem>>, vector<32x32xf32>
    tpu.vector_store %arg9[%c0_5, %c0_6], %5 {strides = array<i32>} : memref<32x32xf32, #tpu.memory_space<vmem>>, vector<32x32xf32>,
    %c0_7 = arith.constant 0 : index
    %c0_8 = arith.constant 0 : index
    %7 = vector.load %arg4[%c0_7, %c0_8] : memref<32x32xf32, #tpu.memory_space<vmem>>, vector<32x32xf32>
    %cst_9 = arith.constant dense<0.000000e+00> : vector<32x32xf32>
    %8 = tpu.matmul %0, %7, %cst_9 {dimension_numbers = #tpu.dot_dimension_numbers<[1], [1], [0], [0], [0, 0, 1, 0], [], []>} : vector<32x32xf32>, vector<32x32xf32>, vector<32x32xf32> -> vector<32x32xf32>
    %c0_10 = arith.constant 0 : index
    %c0_11 = arith.constant 0 : index
    %9 = vector.load %arg7[%c0_10, %c0_11] : memref<1x32xf32, #tpu.memory_space<vmem>>, vector<1x32xf32>
    %10 = vector.broadcast %9 : vector<1x32xf32> to vector<32x32xf32>
    %11 = arith.addf %8, %10 : vector<32x32xf32>
    %c0_12 = arith.constant 0 : index
    %c0_13 = arith.constant 0 : index
    %12 = vector.load %arg10[%c0_12, %c0_13] : memref<32x32xf32, #tpu.memory_space<vmem>>, vector<32x32xf32>
    tpu.vector_store %arg10[%c0_12, %c0_13], %11 {strides = array<i32>} : memref<32x32xf32, #tpu.memory_space<vmem>>, vector<32x32xf32>,
    %c0_14 = arith.constant 0 : index
    %c0_15 = arith.constant 0 : index
    %13 = vector.load %arg5[%c0_14, %c0_15] : memref<32x32xf32, #tpu.memory_space<vmem>>, vector<32x32xf32>
    %cst_16 = arith.constant dense<0.000000e+00> : vector<32x32xf32>
    %14 = tpu.matmul %0, %13, %cst_16 {dimension_numbers = #tpu.dot_dimension_numbers<[1], [1], [0], [0], [0, 0, 1, 0], [], []>} : vector<32x32xf32>, vector<32x32xf32>, vector<32x32xf32> -> vector<32x32xf32>
    %c0_17 = arith.constant 0 : index
    %c0_18 = arith.constant 0 : index
    %15 = vector.load %arg8[%c0_17, %c0_18] : memref<1x32xf32, #tpu.memory_space<vmem>>, vector<1x32xf32>
    %16 = vector.broadcast %15 : vector<1x32xf32> to vector<32x32xf32>
    %17 = arith.addf %14, %16 : vector<32x32xf32>
    %c0_19 = arith.constant 0 : index
    %c0_20 = arith.constant 0 : index
    %18 = vector.load %arg11[%c0_19, %c0_20] : memref<32x32xf32, #tpu.memory_space<vmem>>, vector<32x32xf32>
    tpu.vector_store %arg11[%c0_19, %c0_20], %17 {strides = array<i32>} : memref<32x32xf32, #tpu.memory_space<vmem>>, vector<32x32xf32>,
    return
  }
  func.func @transform_0(%arg0: i32, %arg1: i32) -> (i32, i32) {
    %c0_i32 = arith.constant 0 : i32
    %c0_i32_0 = arith.constant 0 : i32
    return %arg1, %c0_i32 : i32, i32
  }
  func.func @transform_1(%arg0: i32, %arg1: i32) -> (i32, i32) {
    %c0_i32 = arith.constant 0 : i32
    %c0_i32_0 = arith.constant 0 : i32
    return %arg0, %c0_i32 : i32, i32
  }
  func.func @transform_2(%arg0: i32, %arg1: i32) -> (i32, i32) {
    %c0_i32 = arith.constant 0 : i32
    %c0_i32_0 = arith.constant 0 : i32
    return %arg0, %c0_i32 : i32, i32
  }
  func.func @transform_3(%arg0: i32, %arg1: i32) -> (i32, i32) {
    %c0_i32 = arith.constant 0 : i32
    %c0_i32_0 = arith.constant 0 : i32
    return %arg0, %c0_i32 : i32, i32
  }
  func.func @transform_4(%arg0: i32, %arg1: i32) -> (i32, i32) {
    %c0_i32 = arith.constant 0 : i32
    %c0_i32_0 = arith.constant 0 : i32
    return %c0_i32, %arg0 : i32, i32
  }
  func.func @transform_5(%arg0: i32, %arg1: i32) -> (i32, i32) {
    %c0_i32 = arith.constant 0 : i32
    %c0_i32_0 = arith.constant 0 : i32
    return %c0_i32, %arg0 : i32, i32
  }
  func.func @transform_6(%arg0: i32, %arg1: i32) -> (i32, i32) {
    %c0_i32 = arith.constant 0 : i32
    %c0_i32_0 = arith.constant 0 : i32
    return %c0_i32, %arg0 : i32, i32
  }
  func.func @transform_7(%arg0: i32, %arg1: i32) -> (i32, i32) {
    %c0_i32 = arith.constant 0 : i32
    return %arg1, %arg0 : i32, i32
  }
  func.func @transform_8(%arg0: i32, %arg1: i32) -> (i32, i32) {
    %c0_i32 = arith.constant 0 : i32
    return %arg1, %arg0 : i32, i32
  }
  func.func @transform_9(%arg0: i32, %arg1: i32) -> (i32, i32) {
    %c0_i32 = arith.constant 0 : i32
    return %arg1, %arg0 : i32, i32
  }
}

</mosaic_0001>

<bundles_post_ra>
// kernel: tpu_custom_call.1
= control target key start
LH: loop header
LB: loop body
LE: loop exit
PB: predicated region body
PF: predicated region fallthrough
CT: control target
= control target key end

     0   :  { %15 = vsyncpa [#allocation3], 0  ;;  %s915_s0 = inlined_call_operand.hbm [shape: f32[32,32], index: 0, kind: input, shape index: {}]   ;;  %s916_s1 = inlined_call_operand.hbm [shape: f32[32,32], index: 1, kind: input, shape index: {}]   ;;  %s917_s2 = inlined_call_operand.hbm [shape: f32[32,32], index: 2, kind: input, shape index: {}]   ;;  %s918_s3 = inlined_call_operand.hbm [shape: f32[32,32], index: 3, kind: input, shape index: {}]   ;;  %s919_s4 = inlined_call_operand.vmem [shape: f32[1,32], index: 4, kind: input, shape index: {}]   ;;  %s920_s5 = inlined_call_operand.vmem [shape: f32[1,32], index: 5, kind: input, shape index: {}]   ;;  %s921_s6 = inlined_call_operand.vmem [shape: f32[1,32], index: 6, kind: input, shape index: {}]   ;;  %s922_s7 = inlined_call_operand.hbm [shape: f32[32,32], index: 7, kind: output, shape index: {0}]   ;;  %s923_s8 = inlined_call_operand.hbm [shape: f32[32,32], index: 8, kind: output, shape index: {1}]   ;;  %s924_s9 = inlined_call_operand.hbm [shape: f32[32,32], index: 9, kind: output, shape index: {2}]  }
   0x1   :  { %16 = vsyncpa [#allocation6], 0 }
   0x2   :  { %17 = vsyncpa [#allocation9], 0 }
   0x3   :  { %18 = vsyncpa [#allocation4], 0 }
   0x4   :  { %19 = vsyncpa [#allocation12], 0  ;;  %s749_s30 = smov [#allocation5]   ;;  %s750_s11 = smov [#allocation2]  }
   0x5   :  { %s37_s10 = sshll.u32 %s749_s30, 4  ;;  %s25_s12 = sshll.u32 %s750_s11, 4  ;;  %s38_s10 = int_to_ptr.vmem [resolvable:$true] %s37_s10  ;;  %s26_s12 = int_to_ptr.vmem [resolvable:$true] %s25_s12 }
   0x6   :  { %s607_s13 = scalar_lea.vmem %s38_s10, 512  ;;  %p612_p1 = scmp.lt.s32.totalorder %s38_s10, %s38_s10 }
   0x7   :  { %p608_p0 = scmp.ne.s32.totalorder %s38_s10, %s607_s13  ;;  %p613_p2 = scmp.lt.s32.totalorder %s607_s13, %s607_s13 }
   0x9   :  { %p614_p3 = por %p613_p2, %p612_p1 }
   0xb   :  { %p615_p4 = pnand %p614_p3, %p608_p0 }
   0xd   :  { %618 = shalt.err (!%p615_p4)
}
   0xe   :  { %s751_s14 = smov 128   ;;  %s752_s15 = smov 8  }
   0xf   :  { %43 = dma.hbm_to_vmem [thread:$0]  %s916_s1, 512, %s38_s10, [#allocation6], %s751_s14, %s751_s14, %s752_s15  }
  0x10   :  { %s627_s18 = scalar_lea.vmem %s26_s12, 512  ;;  %p632_p6 = scmp.lt.s32.totalorder %s26_s12, %s26_s12 }
  0x11   :  { %p628_p5 = scmp.ne.s32.totalorder %s26_s12, %s627_s18  ;;  %p633_p7 = scmp.lt.s32.totalorder %s627_s18, %s627_s18 }
  0x13   :  { %p634_p8 = por %p633_p7, %p632_p6 }
  0x15   :  { %p635_p9 = pnand %p634_p8, %p628_p5 }
  0x17   :  { %638 = shalt.err (!%p635_p9)
}
  0x18   :  { %31 = dma.hbm_to_vmem [thread:$0]  %s915_s0, 512, %s26_s12, [#allocation3], %s751_s14, %s751_s14, %s752_s15  }
  0x19   :  { %s753_s21 = smov [#allocation7]   ;;  %s754_s23 = smov [#allocation8]  }
  0x1a   :  { %s49_s22 = sshll.u32 %s753_s21, 4  ;;  %s61_s24 = sshll.u32 %s754_s23, 4  ;;  %s50_s22 = int_to_ptr.vmem [resolvable:$true] %s49_s22  ;;  %s62_s24 = int_to_ptr.vmem [resolvable:$true] %s61_s24 }
  0x1b   :  { %s647_s1 = scalar_lea.vmem %s50_s22, 512  ;;  %p652_p11 = scmp.lt.s32.totalorder %s50_s22, %s50_s22 }
  0x1c   :  { %p648_p10 = scmp.ne.s32.totalorder %s50_s22, %s647_s1  ;;  %p653_p12 = scmp.lt.s32.totalorder %s647_s1, %s647_s1 }
  0x1e   :  { %p654_p13 = por %p653_p12, %p652_p11 }
  0x20   :  { %p655_p0 = pnand %p654_p13, %p648_p10 }
  0x22   :  { %658 = shalt.err (!%p655_p0)
}
  0x23   :  { %55 = dma.hbm_to_vmem [thread:$0]  %s917_s2, 512, %s50_s22, [#allocation6], %s751_s14, %s751_s14, %s752_s15  }
  0x24   :  { %s667_s0 = scalar_lea.vmem %s62_s24, 512  ;;  %p672_p2 = scmp.lt.s32.totalorder %s62_s24, %s62_s24 }
  0x25   :  { %p668_p1 = scmp.ne.s32.totalorder %s62_s24, %s667_s0  ;;  %p673_p3 = scmp.lt.s32.totalorder %s667_s0, %s667_s0 }
  0x27   :  { %p674_p4 = por %p673_p3, %p672_p2 }
  0x29   :  { %p675_p5 = pnand %p674_p4, %p668_p1 }
  0x2b   :  { %678 = shalt.err (!%p675_p5)
}
  0x2c   :  { %67 = dma.hbm_to_vmem [thread:$0]  %s918_s3, 512, %s62_s24, [#allocation9], %s751_s14, %s751_s14, %s752_s15  }
  0x2d   :  { %739 = dma.done.wait [#allocation3], 512  }
  0x2e   :  { %740 = vsyncadd [#allocation3], 4294966784 }
  0x2f   :  { %741 = dma.done.wait [#allocation6], 1024  }
  0x30   :  { %742 = vsyncadd [#allocation6], 4294966272 }
  0x31   :  { %743 = dma.done.wait [#allocation9], 512  }
  0x32   :  { %744 = vsyncadd [#allocation9], 4294966784  ;;  %vm101_vm0 = vcmask 261120   ;;  %v93_v0 = vld [vmem:[#allocation5 + $0x18] sm:$0xff]  ;;  %v92_v2 = vld [vmem:[#allocation5 + $0x10] sm:$0xff]  ;;  %s755_s10 = smov [#allocation11]  }
  0x33   :  { %v218_v1 = vld [vmem:[#allocation7 + $0x18] sm:$0xff]  ;;  %540 = vmatprep.subr.msk.mxu0 %vm101_vm0, %v93_v0  ;;  %v217_v3 = vld [vmem:[#allocation7 + $0x10] sm:$0xff]  ;;  %v86_v4 = vld [vmem:[#allocation2] sm:$0xff] }
  0x34   :  { %554 = vmatprep.subr.msk.mxu1 %vm101_vm0, %v218_v1  ;;  %541 = vmatpush3.xpose.msk.msra.mxu0 %vm101_vm0, %v93_v0  ;;  %v91_v5 = vld [vmem:[#allocation5 + $0x8] sm:$0xff]  ;;  %v90_v7 = vld [vmem:[#allocation5] sm:$0xff]  ;;  %v330_v9 = vld [vmem:[#allocation8 + $0x18] sm:$0xff] }
  0x35   :  { %555 = vmatpush3.xpose.msk.msra.mxu1 %vm101_vm0, %v218_v1  ;;  %542 = vmatprep.subr.msk.mxu0 %vm101_vm0, %v92_v2  ;;  %v216_v6 = vld [vmem:[#allocation7 + $0x8] sm:$0xff]  ;;  %v215_v8 = vld [vmem:[#allocation7] sm:$0xff]  ;;  %v329_v11 = vld [vmem:[#allocation8 + $0x10] sm:$0xff] }
  0x36   :  { %556 = vmatprep.subr.msk.mxu1 %vm101_vm0, %v217_v3  ;;  %548 = vmatprep.mubr.msk.f32.mxu0 %vm101_vm0, %v86_v4  ;;  %v87_v10 = vld [vmem:[#allocation2 + $0x8] sm:$0xff]  ;;  %v88_v12 = vld [vmem:[#allocation2 + $0x10] sm:$0xff]  ;;  %v89_v13 = vld [vmem:[#allocation2 + $0x18] sm:$0xff] }
  0x37   :  { %562 = vmatprep.mubr.msk.f32.mxu1 %vm101_vm0, %v86_v4  ;;  %v328_v14 = vld [vmem:[#allocation8 + $0x8] sm:$0xff]  ;;  %v327_v15 = vld [vmem:[#allocation8] sm:$0xff] }
  0x38   :  { %543 = vmatpush3.xpose.msk.msra.mxu0 %vm101_vm0, %v92_v2  ;;  %v489_v16 = vld [vmem:[%s919_s4] ss:$0 sm:$0xff]  ;;  %s456_s4 = sshll.u32 %s755_s10, 4  ;;  %s457_s4 = int_to_ptr.vmem [resolvable:$true] %s456_s4 }
  0x39   :  { %557 = vmatpush3.xpose.msk.msra.mxu1 %vm101_vm0, %v217_v3  ;;  %544 = vmatprep.subr.msk.mxu0 %vm101_vm0, %v91_v5  ;;  %v498_v17 = vld [vmem:[%s920_s5] ss:$0 sm:$0xff]  ;;  %s756_s5 = smov [#allocation10]   ;;  %s679_s12 = scalar_lea.vmem %s457_s4, 512 }
  0x3a   :  { %558 = vmatprep.subr.msk.mxu1 %vm101_vm0, %v216_v6  ;;  %s444_s11 = sshll.u32 %s756_s5, 4  ;;  %p680_p6 = scmp.ne.s32.totalorder %s457_s4, %s679_s12  ;;  %s445_s11 = int_to_ptr.vmem [resolvable:$true] %s444_s11 }
  0x3b   :  { %p684_p7 = scmp.lt.s32.totalorder %s457_s4, %s457_s4  ;;  %p685_p8 = scmp.lt.s32.totalorder %s679_s12, %s679_s12 }
  0x3c   :  { %545 = vmatpush3.xpose.msk.msra.mxu0 %vm101_vm0, %v91_v5 }
  0x3d   :  { %559 = vmatpush3.xpose.msk.msra.mxu1 %vm101_vm0, %v216_v6  ;;  %546 = vmatprep.subr.msk.mxu0 %vm101_vm0, %v90_v7  ;;  %p686_p9 = por %p685_p8, %p684_p7 }
  0x3e   :  { %560 = vmatprep.subr.msk.mxu1 %vm101_vm0, %v215_v8 }
  0x3f   :  { %p687_p10 = pnand %p686_p9, %p680_p6 }
  0x40   :  { %547 = vmatpush3.xpose.msk.msra.mxu0 %vm101_vm0, %v90_v7 }
  0x41   :  { %561 = vmatpush3.xpose.msk.msra.mxu1 %vm101_vm0, %v215_v8  ;;  %568 = vmatprep.subr.msk.mxu0 %vm101_vm0, %v330_v9 }
  0x42   :  { %582 = vmatprep.subr.msk.mxu1 %vm101_vm0, %v330_v9 }
  0x43   :  { %549 = vmatmul.mubr.msk.f32.vlgmr.msra.gmra.mxu0 %vm101_vm0, %v87_v10 }
  0x44   :  { %563 = vmatmul.mubr.msk.f32.vlgmr.msra.gmra.mxu1 %vm101_vm0, %v87_v10  ;;  %569 = vmatpush3.xpose.msk.msra.mxu0 %vm101_vm0, %v330_v9 }
  0x45   :  { %586 = vmatpush3.xpose.msk.msra.mxu1 %vm101_vm0, %v330_v9  ;;  %570 = vmatprep.subr.msk.mxu0 %vm101_vm0, %v329_v11 }
  0x46   :  { %583 = vmatprep.subr.msk.mxu1 %vm101_vm0, %v329_v11  ;;  %551 = vmatprep.mubr.msk.f32.mxu0 %vm101_vm0, %v88_v12 }
  0x47   :  { %565 = vmatprep.mubr.msk.f32.mxu1 %vm101_vm0, %v88_v12  ;;  %552 = vmatmul.mubr.msk.f32.gmra.mxu0 %vm101_vm0, %v89_v13 }
  0x48   :  { %566 = vmatmul.mubr.msk.f32.gmra.mxu1 %vm101_vm0, %v89_v13  ;;  %571 = vmatpush3.xpose.msk.msra.mxu0 %vm101_vm0, %v329_v11 }
  0x49   :  { %587 = vmatpush3.xpose.msk.msra.mxu1 %vm101_vm0, %v329_v11  ;;  %572 = vmatprep.subr.msk.mxu0 %vm101_vm0, %v328_v14 }
  0x4a   :  { %584 = vmatprep.subr.msk.mxu1 %vm101_vm0, %v328_v14  ;;  %576 = vmatprep.mubr.msk.f32.mxu0 %vm101_vm0, %v86_v4 }
  0x4b   :  { %579 = vmatprep.mubr.msk.f32.mxu1 %vm101_vm0, %v88_v12 }
  0x4c   :  { %573 = vmatpush3.xpose.msk.msra.mxu0 %vm101_vm0, %v328_v14 }
  0x4d   :  { %588 = vmatpush3.xpose.msk.msra.mxu1 %vm101_vm0, %v328_v14  ;;  %574 = vmatprep.subr.msk.mxu0 %vm101_vm0, %v327_v15 }
  0x4e   :  { %585 = vmatprep.subr.msk.mxu1 %vm101_vm0, %v327_v15 }
  0x50   :  { %575 = vmatpush3.xpose.msk.msra.mxu0 %vm101_vm0, %v327_v15 }
  0x51   :  { %589 = vmatpush3.xpose.msk.msra.mxu1 %vm101_vm0, %v327_v15 }
  0x53   :  { %577 = vmatmul.mubr.msk.f32.vlgmr.msra.gmra.mxu0 %vm101_vm0, %v87_v10 }
  0x54   :  { %580 = vmatmul.mubr.msk.f32.vlgmr.msra.gmra.mxu1 %vm101_vm0, %v89_v13 }
 0x103   :  { %v550_v18 = vpop.f32.mrf.mxu0 }
 0x104   :  { %v564_v19 = vpop.f32.mrf.mxu1  ;;  %v198_v20 = vadd.f32 %v550_v18, %v489_v16 }
 0x105   :  { %v310_v21 = vadd.f32 %v564_v19, %v498_v17  ;;  %v192_v22 = vpop.f32.mrf.mxu0 }
 0x106   :  { %v304_v23 = vpop.f32.mrf.mxu1  ;;  %212 = vst.msk [vmem:[#allocation10 + $0x8] sm:$0xff] %vm101_vm0, %v198_v20  ;;  %v193_v24 = vadd.f32 %v489_v16, %v192_v22 }
 0x107   :  { %324 = vst.msk [vmem:[#allocation11 + $0x8] sm:$0xff] %vm101_vm0, %v310_v21  ;;  %v305_v25 = vadd.f32 %v498_v17, %v304_v23  ;;  %v553_v26 = vpop.f32.mrf.mxu0 }
 0x108   :  { %v567_v27 = vpop.f32.mrf.mxu1  ;;  %211 = vst.msk [vmem:[#allocation10] sm:$0xff] %vm101_vm0, %v193_v24  ;;  %v208_v28 = vadd.f32 %v553_v26, %v489_v16 }
 0x109   :  { %323 = vst.msk [vmem:[#allocation11] sm:$0xff] %vm101_vm0, %v305_v25  ;;  %v320_v29 = vadd.f32 %v567_v27, %v498_v17  ;;  %v202_v30 = vpop.f32.mrf.mxu0 }
 0x10a   :  { %v314_v31 = vpop.f32.mrf.mxu1  ;;  %214 = vst.msk [vmem:[#allocation10 + $0x18] sm:$0xff] %vm101_vm0, %v208_v28  ;;  %v203_v32 = vadd.f32 %v489_v16, %v202_v30 }
 0x10b   :  { %326 = vst.msk [vmem:[#allocation11 + $0x18] sm:$0xff] %vm101_vm0, %v320_v29  ;;  %v315_v33 = vadd.f32 %v498_v17, %v314_v31 }
 0x10c   :  { %213 = vst.msk [vmem:[#allocation10 + $0x10] sm:$0xff] %vm101_vm0, %v203_v32 }
 0x10d   :  { %325 = vst.msk [vmem:[#allocation11 + $0x10] sm:$0xff] %vm101_vm0, %v315_v33 }
 0x10e   :  { %690 = shalt.err (!%p687_p10)
}
 0x10f   :  { %462 = dma.vmem_to_hbm [thread:$0]  %s457_s4, 512, %s923_s8, [#allocation12], %s751_s14, %s751_s14, %s752_s15  }
 0x110   :  { %s699_s17 = scalar_lea.vmem %s445_s11, 512  ;;  %p704_p12 = scmp.lt.s32.totalorder %s445_s11, %s445_s11 }
 0x111   :  { %p700_p11 = scmp.ne.s32.totalorder %s445_s11, %s699_s17  ;;  %p705_p13 = scmp.lt.s32.totalorder %s699_s17, %s699_s17 }
 0x113   :  { %p706_p0 = por %p705_p13, %p704_p12 }
 0x115   :  { %p707_p1 = pnand %p706_p0, %p700_p11 }
 0x117   :  { %710 = shalt.err (!%p707_p1)
}
 0x118   :  { %450 = dma.vmem_to_hbm [thread:$0]  %s445_s11, 512, %s922_s7, [#allocation4], %s751_s14, %s751_s14, %s752_s15   ;;  %v578_v35 = vpop.f32.mrf.mxu0  ;;  %v581_v36 = vpop.f32.mrf.mxu1 }
 0x119   :  { %v507_v34 = vld [vmem:[%s921_s6] ss:$0 sm:$0xff]  ;;  %s757_s8 = smov [#allocation13]  }
 0x11a   :  { %s468_s22 = sshll.u32 %s757_s8, 4  ;;  %v422_v37 = vadd.f32 %v578_v35, %v507_v34  ;;  %v432_v38 = vadd.f32 %v581_v36, %v507_v34  ;;  %v416_v39 = vpop.f32.mrf.mxu0  ;;  %v426_v40 = vpop.f32.mrf.mxu1  ;;  %s469_s22 = int_to_ptr.vmem [resolvable:$true] %s468_s22 }
 0x11b   :  { %v417_v41 = vadd.f32 %v507_v34, %v416_v39  ;;  %v427_v42 = vadd.f32 %v507_v34, %v426_v40  ;;  %s719_s6 = scalar_lea.vmem %s469_s22, 512  ;;  %p724_p3 = scmp.lt.s32.totalorder %s469_s22, %s469_s22 }
 0x11c   :  { %436 = vst.msk [vmem:[#allocation13 + $0x8] sm:$0xff] %vm101_vm0, %v422_v37  ;;  %438 = vst.msk [vmem:[#allocation13 + $0x18] sm:$0xff] %vm101_vm0, %v432_v38  ;;  %p720_p2 = scmp.ne.s32.totalorder %s469_s22, %s719_s6  ;;  %p725_p4 = scmp.lt.s32.totalorder %s719_s6, %s719_s6 }
 0x11d   :  { %435 = vst.msk [vmem:[#allocation13] sm:$0xff] %vm101_vm0, %v417_v41  ;;  %437 = vst.msk [vmem:[#allocation13 + $0x10] sm:$0xff] %vm101_vm0, %v427_v42 }
 0x11e   :  { %p726_p5 = por %p725_p4, %p724_p3 }
 0x120   :  { %p727_p6 = pnand %p726_p5, %p720_p2 }
 0x122   :  { %730 = shalt.err (!%p727_p6)
}
 0x123   :  { %474 = dma.vmem_to_hbm [thread:$0]  %s469_s22, 512, %s924_s9, [#allocation12], %s751_s14, %s751_s14, %s752_s15  }
 0x124   :  { %745 = dma.done.wait [#allocation4], 512  }
 0x125   :  { %746 = vsyncadd [#allocation4], 4294966784 }
 0x126   :  { %747 = dma.done.wait [#allocation12], 1024  }
 0x127   :  { %748 = vsyncadd [#allocation12], 4294966272 }
 0x128   :  { %484 = vsyncpa [#allocation3], 1 }
 0x129   :  { %485 = vsyncpa [#allocation6], 1 }
 0x12a   :  { %486 = vsyncpa [#allocation9], 1 }
 0x12b   :  { %487 = vsyncpa [#allocation4], 1 }
 0x12c   :  { %488 = vsyncpa [#allocation12], 1 }

</bundles_post_ra>
